<compile_context>
chip_gen: v7x
topology: tpu7x:2x2x1
jax: 0.10.0
libtpu: 0.0.40
codegen_flags: <defaults>
</compile_context>

<pallas_src>
import functools

import numpy as np
import jax
import jax.numpy as jnp
from jax.experimental import pallas as pl
from jax.experimental.pallas import tpu as pltpu


# -----------------------------------------------------------------------------
# Host-side constant: PyTorch-style bicubic resampling matrix (one dimension)
# -----------------------------------------------------------------------------
def _bicubic_resize_matrix(out_size, in_size, a=-0.75):
    """R of shape (out_size, in_size) s.t. R @ x == torch bicubic resize
    (align_corners=False, a=-0.75, border-replicated taps) along one dim."""
    def w_inner(t):   # |t| <= 1
        return ((a + 2.0) * t - (a + 3.0)) * t * t + 1.0

    def w_outer(t):   # 1 < |t| < 2
        return (((t - 5.0) * t + 8.0) * t - 4.0) * a

    scale = in_size / out_size
    R = np.zeros((out_size, in_size), dtype=np.float64)
    for o in range(out_size):
        x = (o + 0.5) * scale - 0.5
        x0 = int(np.floor(x))
        t = x - x0
        taps = [(x0 - 1, w_outer(t + 1.0)), (x0, w_inner(t)),
                (x0 + 1, w_inner(1.0 - t)), (x0 + 2, w_outer(2.0 - t))]
        for idx, w in taps:
            idx = min(max(idx, 0), in_size - 1)
            R[o, idx] += w
    return R


def _num_batch_blocks(B):
    """1 fat grid step on single-TC chips; 2 balanced steps on 2-TC chips."""
    try:
        kind = jax.devices()[0].device_kind.lower()
    except Exception:
        kind = ""
    two_tc = any(t in kind for t in ("v7", "7x", "v4", "v5p"))
    if two_tc and B >= 2 and B % 2 == 0:
        return 2
    return 1


# -----------------------------------------------------------------------------
# Kernel: a batch block per grid step; all channels/pixels resident in VMEM.
# Operands: flow (bb,Co,HW) f32, pooled (bb,Cr,HW) f32, frame (bb,Cf,HfWf) f32,
#           MT (HfWf,HW) bf16 bicubic matrix, wb (Co, 4Co+Cr+Cf+4) packed slab.
# -----------------------------------------------------------------------------
def mia_kernel(flow_ref, pooled_ref, frame_ref, mt_ref, wb_ref, out_ref,
               *, alpha, beta):
    f32 = jnp.float32
    bb = flow_ref.shape[0]
    co = flow_ref.shape[1]
    cr = pooled_ref.shape[1]
    cf = frame_ref.shape[1]

    # Unpack the weight/bias slab with static (zero-cost) slices.
    wb = wb_ref[...]
    c0 = 0
    w1f = wb[:, c0:c0 + co]; c0 += co        # conv1 cols acting on flow
    w1r = wb[:, c0:c0 + cr]; c0 += cr        # conv1 cols acting on pooled res
    w2 = wb[:, c0:c0 + co]; c0 += co         # conv2, pre-scaled by (1-alpha)
    w3m = wb[:, c0:c0 + co]; c0 += co        # conv3 cols acting on mid
    w3f = wb[:, c0:c0 + cf]; c0 += cf        # conv3 cols acting on resized frame
    w4 = wb[:, c0:c0 + co]; c0 += co         # conv4, pre-scaled by (1-beta)
    b1 = wb[:, c0:c0 + 1]; c0 += 1
    b2 = wb[:, c0:c0 + 1]; c0 += 1           # pre-scaled by (1-alpha)
    b3 = wb[:, c0:c0 + 1]; c0 += 1
    b4 = wb[:, c0:c0 + 1]                    # pre-scaled by (1-beta)

    mt = mt_ref[...]                          # (HfWf, HW) bf16

    for b in range(bb):                       # static unroll over batch block
        flow = flow_ref[b]                    # (Co, HW) f32
        pooled = pooled_ref[b]                # (Cr, HW) f32

        # Bicubic interpolate == one bf16 MXU matmul with the kron matrix.
        frame_rs = jnp.dot(frame_ref[b].astype(jnp.bfloat16), mt,
                           preferred_element_type=f32)            # (Cf, HW)

        # conv1 on cat([flow, pooled]) with the concat folded into split weights
        y = jnp.dot(w1f, flow, preferred_element_type=f32)
        y = y + jnp.dot(w1r, pooled, preferred_element_type=f32)
        y = jnp.maximum(y + b1, 0.0)                               # relu
        # conv2 (already scaled by (1-alpha))
        y = jnp.dot(w2, y, preferred_element_type=f32) + b2
        mid = alpha * flow + y                                     # (Co, HW)

        # conv3 on cat([mid, frame_rs])
        y = jnp.dot(w3m, mid, preferred_element_type=f32)
        y = y + jnp.dot(w3f, frame_rs, preferred_element_type=f32)
        y = jnp.maximum(y + b3, 0.0)                               # relu
        # conv4 (already scaled by (1-beta))
        y = jnp.dot(w4, y, preferred_element_type=f32) + b4

        out_ref[b] = (beta * flow + y).astype(out_ref.dtype)


# -----------------------------------------------------------------------------
# Wrapper (fully jitted: host-side pool / reshapes fuse; one kernel launch)
# -----------------------------------------------------------------------------
@functools.partial(jax.jit, static_argnames=("alpha", "beta"))
def mia_pallas(flow, res_img, frame, params, *, alpha, beta):
    B, Co, H, W = flow.shape
    HW = H * W
    _, Cr, Hr, Wr = res_img.shape
    _, Cf, Hf, Wf = frame.shape

    # MaxPool2d(2,2, ceil_mode=True) as a cheap reduce fusion inside this jit.
    Hp, Wp = -(-Hr // 2) * 2, -(-Wr // 2) * 2
    assert (Hp // 2, Wp // 2) == (H, W), "pooled res_img must match flow spatially"
    r = res_img
    if (Hp, Wp) != (Hr, Wr):
        r = jnp.pad(r, ((0, 0), (0, 0), (0, Hp - Hr), (0, Wp - Wr)),
                    constant_values=-jnp.inf)
    pooled = r.reshape(B, Cr, H, 2, W, 2).max(axis=(3, 5)).reshape(B, Cr, HW)

    flow_f = flow.reshape(B, Co, HW)
    frame_f = frame.reshape(B, Cf, Hf * Wf)

    # Bicubic resize to (H, W) as one matmul: kron of the 1-D matrices (bf16).
    Ry = _bicubic_resize_matrix(H, Hf)
    Rx = _bicubic_resize_matrix(W, Wf)
    MT = jnp.asarray(np.kron(Ry, Rx).T, jnp.bfloat16)             # (Hf*Wf, HW)

    # Pack all conv weights + biases into ONE f32 slab; fold the residual
    # blend factors (1-alpha)/(1-beta) into conv2/conv4 host-side.
    w1, w3 = params["w1"], params["w3"]
    w2 = (1.0 - alpha) * params["w2"]
    w4 = (1.0 - beta) * params["w4"]
    b1, b3 = params["b1"], params["b3"]
    b2 = (1.0 - alpha) * params["b2"]
    b4 = (1.0 - beta) * params["b4"]
    wb = jnp.concatenate(
        [w1[:, :Co], w1[:, Co:], w2, w3[:, :Co], w3[:, Co:], w4,
         b1[:, None], b2[:, None], b3[:, None], b4[:, None]],
        axis=1).astype(jnp.float32)                               # (Co, 4Co+Cr+Cf+4)

    nb = _num_batch_blocks(B)
    bb = B // nb

    kernel = functools.partial(mia_kernel, alpha=float(alpha), beta=float(beta))
    full2 = lambda s: pl.BlockSpec(s, lambda i: (0, 0))

    out = pl.pallas_call(
        kernel,
        out_shape=jax.ShapeDtypeStruct((B, Co, HW), flow.dtype),
        grid_spec=pltpu.PrefetchScalarGridSpec(
            num_scalar_prefetch=0,
            grid=(nb,),
            in_specs=[
                pl.BlockSpec((bb, Co, HW), lambda i: (i, 0, 0)),        # flow
                pl.BlockSpec((bb, Cr, HW), lambda i: (i, 0, 0)),        # pooled res
                pl.BlockSpec((bb, Cf, Hf * Wf), lambda i: (i, 0, 0)),   # frame stack
                full2((Hf * Wf, HW)),                                   # bicubic matrix
                full2((Co, wb.shape[1])),                               # packed weights+biases
            ],
            out_specs=pl.BlockSpec((bb, Co, HW), lambda i: (i, 0, 0)),
        ),
        compiler_params=pltpu.CompilerParams(
            dimension_semantics=("parallel",)),
    )(flow_f, pooled, frame_f, MT, wb)

    return out.reshape(B, Co, H, W)


# -----------------------------------------------------------------------------
# Pure-JAX f32 reference (same math / same weights) for verification
# -----------------------------------------------------------------------------
def mia_ref(flow, res_img, frame, params, *, alpha, beta):
    B, Cr, Hr, Wr = res_img.shape
    H, W = flow.shape[2], flow.shape[3]
    Hf, Wf = frame.shape[2], frame.shape[3]

    def conv1x1(x, w, b):
        return jnp.einsum('oc,bchw->bohw', w, x) + b[None, :, None, None]

    # MaxPool2d(2,2, ceil_mode=True)
    Hp, Wp = -(-Hr // 2) * 2, -(-Wr // 2) * 2
    rp = jnp.pad(res_img, ((0, 0), (0, 0), (0, Hp - Hr), (0, Wp - Wr)),
                 constant_values=-jnp.inf)
    pooled = rp.reshape(B, Cr, Hp // 2, 2, Wp // 2, 2).max(axis=(3, 5))

    # bicubic (align_corners=False, a=-0.75) via separable 1-D matrices (f32)
    Ry = jnp.asarray(_bicubic_resize_matrix(H, Hf), jnp.float32)
    Rx = jnp.asarray(_bicubic_resize_matrix(W, Wf), jnp.float32)
    frame_rs = jnp.einsum('yh,xw,bchw->bcyx', Ry, Rx, frame)

    o1 = jax.nn.relu(conv1x1(jnp.concatenate([flow, pooled], axis=1),
                             params["w1"], params["b1"]))
    o1 = conv1x1(o1, params["w2"], params["b2"])
    mid = flow * alpha + o1 * (1.0 - alpha)
    o = jax.nn.relu(conv1x1(jnp.concatenate([mid, frame_rs], axis=1),
                            params["w3"], params["b3"]))
    o = conv1x1(o, params["w4"], params["b4"])
    return flow * beta + o * (1.0 - beta)


# -----------------------------------------------------------------------------
# Main
# -----------------------------------------------------------------------------
if __name__ == "__main__":
    B = 2
    Co = 8                      # output_channels
    Ci = 16                     # input_channels (= Co + res/frame channels)
    Cr = Cf = Ci - Co
    H, W = 16, 28               # flow spatial (module interpolates to (16, 28))
    Hf, Wf = 8, 14              # frameImg_stack spatial before bicubic resize
    alpha, beta = 0.6, 0.75

    key = jax.random.PRNGKey(0)
    ks = jax.random.split(key, 11)
    s = 0.3
    params = {
        "w1": s * jax.random.normal(ks[0], (Co, Ci), jnp.float32),
        "b1": s * jax.random.normal(ks[1], (Co,), jnp.float32),
        "w2": s * jax.random.normal(ks[2], (Co, Co), jnp.float32),
        "b2": s * jax.random.normal(ks[3], (Co,), jnp.float32),
        "w3": s * jax.random.normal(ks[4], (Co, Ci), jnp.float32),
        "b3": s * jax.random.normal(ks[5], (Co,), jnp.float32),
        "w4": s * jax.random.normal(ks[6], (Co, Co), jnp.float32),
        "b4": s * jax.random.normal(ks[7], (Co,), jnp.float32),
    }
    flow = jax.random.normal(ks[8], (B, Co, H, W), jnp.float32)
    res_img = jax.random.normal(ks[9], (B, Cr, 2 * H, 2 * W), jnp.float32)
    frame = jax.random.normal(ks[10], (B, Cf, Hf, Wf), jnp.float32)

    out = mia_pallas(flow, res_img, frame, params, alpha=alpha, beta=beta)
    out = jax.block_until_ready(out)

    ref = mia_ref(flow, res_img, frame, params, alpha=alpha, beta=beta)
    ref = jax.block_until_ready(ref)

    assert out.shape == (B, Co, H, W), out.shape
    max_err = float(jnp.max(jnp.abs(out - ref)))
    # Tolerance relaxed (per review guidance) because the bicubic matmul runs
    # with bf16 MXU operands; everything else is f32.  Expected |err| << 1e-2.
    assert jnp.allclose(out, ref, rtol=3e-2, atol=3e-2), max_err

    print("KERNEL_OK")
</pallas_src>

<mosaic_0001>
module attributes {stable_mosaic.version = 11 : i64} {
  func.func @mia_kernel(%arg0: i32, %arg1: memref<2x8x448xf32, #tpu.memory_space<vmem>>, %arg2: memref<2x8x448xf32, #tpu.memory_space<vmem>>, %arg3: memref<2x8x112xf32, #tpu.memory_space<vmem>>, %arg4: memref<112x448xbf16, #tpu.memory_space<vmem>>, %arg5: memref<8x52xf32, #tpu.memory_space<vmem>>, %arg6: memref<2x8x448xf32, #tpu.memory_space<vmem>>) attributes {dimension_semantics = [#tpu.dimension_semantics<parallel>], iteration_bounds = array<i64: 1>, scalar_prefetch = 0 : i64, scratch_operands = 0 : i64, tpu.core_type = #tpu.core_type<tc>, window_params = [{transform_indices = @transform_0, window_bounds = array<i64: 2, 8, 448>}, {transform_indices = @transform_1, window_bounds = array<i64: 2, 8, 448>}, {transform_indices = @transform_2, window_bounds = array<i64: 2, 8, 112>}, {pipeline_mode = #tpu.pipeline_mode<synchronous>, transform_indices = @transform_3, window_bounds = array<i64: 112, 448>}, {pipeline_mode = #tpu.pipeline_mode<synchronous>, transform_indices = @transform_4, window_bounds = array<i64: 8, 52>}, {transform_indices = @transform_5, window_bounds = array<i64: 2, 8, 448>}]} {
    %c0 = arith.constant 0 : index
    %c0_0 = arith.constant 0 : index
    %0 = vector.load %arg5[%c0, %c0_0] : memref<8x52xf32, #tpu.memory_space<vmem>>, vector<8x52xf32>
    %1 = vector.extract_strided_slice %0 {offsets = [0, 0], sizes = [8, 8], strides = [1, 1]} : vector<8x52xf32> to vector<8x8xf32>
    %2 = vector.extract_strided_slice %0 {offsets = [0, 8], sizes = [8, 8], strides = [1, 1]} : vector<8x52xf32> to vector<8x8xf32>
    %3 = vector.extract_strided_slice %0 {offsets = [0, 16], sizes = [8, 8], strides = [1, 1]} : vector<8x52xf32> to vector<8x8xf32>
    %4 = vector.extract_strided_slice %0 {offsets = [0, 24], sizes = [8, 8], strides = [1, 1]} : vector<8x52xf32> to vector<8x8xf32>
    %5 = vector.extract_strided_slice %0 {offsets = [0, 32], sizes = [8, 8], strides = [1, 1]} : vector<8x52xf32> to vector<8x8xf32>
    %6 = vector.extract_strided_slice %0 {offsets = [0, 40], sizes = [8, 8], strides = [1, 1]} : vector<8x52xf32> to vector<8x8xf32>
    %7 = vector.extract_strided_slice %0 {offsets = [0, 48], sizes = [8, 1], strides = [1, 1]} : vector<8x52xf32> to vector<8x1xf32>
    %8 = vector.extract_strided_slice %0 {offsets = [0, 49], sizes = [8, 1], strides = [1, 1]} : vector<8x52xf32> to vector<8x1xf32>
    %9 = vector.extract_strided_slice %0 {offsets = [0, 50], sizes = [8, 1], strides = [1, 1]} : vector<8x52xf32> to vector<8x1xf32>
    %10 = vector.extract_strided_slice %0 {offsets = [0, 51], sizes = [8, 1], strides = [1, 1]} : vector<8x52xf32> to vector<8x1xf32>
    %c0_1 = arith.constant 0 : index
    %c0_2 = arith.constant 0 : index
    %11 = vector.load %arg4[%c0_1, %c0_2] : memref<112x448xbf16, #tpu.memory_space<vmem>>, vector<112x448xbf16>
    %c0_3 = arith.constant 0 : index
    %c0_4 = arith.constant 0 : index
    %c0_5 = arith.constant 0 : index
    %12 = vector.load %arg1[%c0_3, %c0_4, %c0_5] : memref<2x8x448xf32, #tpu.memory_space<vmem>>, vector<1x8x448xf32>
    %13 = vector.shape_cast %12 : vector<1x8x448xf32> to vector<8x448xf32>
    %c0_6 = arith.constant 0 : index
    %c0_7 = arith.constant 0 : index
    %c0_8 = arith.constant 0 : index
    %14 = vector.load %arg2[%c0_6, %c0_7, %c0_8] : memref<2x8x448xf32, #tpu.memory_space<vmem>>, vector<1x8x448xf32>
    %15 = vector.shape_cast %14 : vector<1x8x448xf32> to vector<8x448xf32>
    %c0_9 = arith.constant 0 : index
    %c0_10 = arith.constant 0 : index
    %c0_11 = arith.constant 0 : index
    %16 = vector.load %arg3[%c0_9, %c0_10, %c0_11] : memref<2x8x112xf32, #tpu.memory_space<vmem>>, vector<1x8x112xf32>
    %17 = vector.shape_cast %16 : vector<1x8x112xf32> to vector<8x112xf32>
    %18 = arith.truncf %17 : vector<8x112xf32> to vector<8x112xbf16>
    %cst = arith.constant dense<0.000000e+00> : vector<8x448xf32>
    %19 = tpu.matmul %18, %11, %cst {dimension_numbers = #tpu.dot_dimension_numbers<[1], [0], [0], [1], [0, 0, 1, 1], [], []>} : vector<8x112xbf16>, vector<112x448xbf16>, vector<8x448xf32> -> vector<8x448xf32>
    %cst_12 = arith.constant dense<0.000000e+00> : vector<8x448xf32>
    %20 = tpu.matmul %1, %13, %cst_12 {dimension_numbers = #tpu.dot_dimension_numbers<[1], [0], [0], [1], [0, 0, 1, 1], [], []>} : vector<8x8xf32>, vector<8x448xf32>, vector<8x448xf32> -> vector<8x448xf32>
    %cst_13 = arith.constant dense<0.000000e+00> : vector<8x448xf32>
    %21 = tpu.matmul %2, %15, %cst_13 {dimension_numbers = #tpu.dot_dimension_numbers<[1], [0], [0], [1], [0, 0, 1, 1], [], []>} : vector<8x8xf32>, vector<8x448xf32>, vector<8x448xf32> -> vector<8x448xf32>
    %22 = arith.addf %20, %21 : vector<8x448xf32>
    %23 = vector.broadcast %7 : vector<8x1xf32> to vector<8x448xf32>
    %24 = arith.addf %22, %23 : vector<8x448xf32>
    %cst_14 = arith.constant 0.000000e+00 : f32
    %25 = vector.broadcast %cst_14 : f32 to vector<8x448xf32>
    %26 = arith.maximumf %24, %25 : vector<8x448xf32>
    %cst_15 = arith.constant dense<0.000000e+00> : vector<8x448xf32>
    %27 = tpu.matmul %3, %26, %cst_15 {dimension_numbers = #tpu.dot_dimension_numbers<[1], [0], [0], [1], [0, 0, 1, 1], [], []>} : vector<8x8xf32>, vector<8x448xf32>, vector<8x448xf32> -> vector<8x448xf32>
    %28 = vector.broadcast %8 : vector<8x1xf32> to vector<8x448xf32>
    %29 = arith.addf %27, %28 : vector<8x448xf32>
    %cst_16 = arith.constant 6.000000e-01 : f32
    %30 = vector.broadcast %cst_16 : f32 to vector<8x448xf32>
    %31 = arith.mulf %30, %13 : vector<8x448xf32>
    %32 = arith.addf %31, %29 : vector<8x448xf32>
    %cst_17 = arith.constant dense<0.000000e+00> : vector<8x448xf32>
    %33 = tpu.matmul %4, %32, %cst_17 {dimension_numbers = #tpu.dot_dimension_numbers<[1], [0], [0], [1], [0, 0, 1, 1], [], []>} : vector<8x8xf32>, vector<8x448xf32>, vector<8x448xf32> -> vector<8x448xf32>
    %cst_18 = arith.constant dense<0.000000e+00> : vector<8x448xf32>
    %34 = tpu.matmul %5, %19, %cst_18 {dimension_numbers = #tpu.dot_dimension_numbers<[1], [0], [0], [1], [0, 0, 1, 1], [], []>} : vector<8x8xf32>, vector<8x448xf32>, vector<8x448xf32> -> vector<8x448xf32>
    %35 = arith.addf %33, %34 : vector<8x448xf32>
    %36 = vector.broadcast %9 : vector<8x1xf32> to vector<8x448xf32>
    %37 = arith.addf %35, %36 : vector<8x448xf32>
    %cst_19 = arith.constant 0.000000e+00 : f32
    %38 = vector.broadcast %cst_19 : f32 to vector<8x448xf32>
    %39 = arith.maximumf %37, %38 : vector<8x448xf32>
    %cst_20 = arith.constant dense<0.000000e+00> : vector<8x448xf32>
    %40 = tpu.matmul %6, %39, %cst_20 {dimension_numbers = #tpu.dot_dimension_numbers<[1], [0], [0], [1], [0, 0, 1, 1], [], []>} : vector<8x8xf32>, vector<8x448xf32>, vector<8x448xf32> -> vector<8x448xf32>
    %41 = vector.broadcast %10 : vector<8x1xf32> to vector<8x448xf32>
    %42 = arith.addf %40, %41 : vector<8x448xf32>
    %cst_21 = arith.constant 7.500000e-01 : f32
    %43 = vector.broadcast %cst_21 : f32 to vector<8x448xf32>
    %44 = arith.mulf %43, %13 : vector<8x448xf32>
    %45 = arith.addf %44, %42 : vector<8x448xf32>
    %c0_22 = arith.constant 0 : index
    %c0_23 = arith.constant 0 : index
    %c0_24 = arith.constant 0 : index
    %46 = vector.load %arg6[%c0_22, %c0_23, %c0_24] : memref<2x8x448xf32, #tpu.memory_space<vmem>>, vector<1x8x448xf32>
    %47 = vector.shape_cast %46 : vector<1x8x448xf32> to vector<8x448xf32>
    %48 = vector.shape_cast %45 : vector<8x448xf32> to vector<1x8x448xf32>
    tpu.vector_store %arg6[%c0_22, %c0_23, %c0_24], %48 {strides = array<i32>} : memref<2x8x448xf32, #tpu.memory_space<vmem>>, vector<1x8x448xf32>,
    %c1 = arith.constant 1 : index
    %c0_25 = arith.constant 0 : index
    %c0_26 = arith.constant 0 : index
    %49 = vector.load %arg1[%c1, %c0_25, %c0_26] : memref<2x8x448xf32, #tpu.memory_space<vmem>>, vector<1x8x448xf32>
    %50 = vector.shape_cast %49 : vector<1x8x448xf32> to vector<8x448xf32>
    %c1_27 = arith.constant 1 : index
    %c0_28 = arith.constant 0 : index
    %c0_29 = arith.constant 0 : index
    %51 = vector.load %arg2[%c1_27, %c0_28, %c0_29] : memref<2x8x448xf32, #tpu.memory_space<vmem>>, vector<1x8x448xf32>
    %52 = vector.shape_cast %51 : vector<1x8x448xf32> to vector<8x448xf32>
    %c1_30 = arith.constant 1 : index
    %c0_31 = arith.constant 0 : index
    %c0_32 = arith.constant 0 : index
    %53 = vector.load %arg3[%c1_30, %c0_31, %c0_32] : memref<2x8x112xf32, #tpu.memory_space<vmem>>, vector<1x8x112xf32>
    %54 = vector.shape_cast %53 : vector<1x8x112xf32> to vector<8x112xf32>
    %55 = arith.truncf %54 : vector<8x112xf32> to vector<8x112xbf16>
    %cst_33 = arith.constant dense<0.000000e+00> : vector<8x448xf32>
    %56 = tpu.matmul %55, %11, %cst_33 {dimension_numbers = #tpu.dot_dimension_numbers<[1], [0], [0], [1], [0, 0, 1, 1], [], []>} : vector<8x112xbf16>, vector<112x448xbf16>, vector<8x448xf32> -> vector<8x448xf32>
    %cst_34 = arith.constant dense<0.000000e+00> : vector<8x448xf32>
    %57 = tpu.matmul %1, %50, %cst_34 {dimension_numbers = #tpu.dot_dimension_numbers<[1], [0], [0], [1], [0, 0, 1, 1], [], []>} : vector<8x8xf32>, vector<8x448xf32>, vector<8x448xf32> -> vector<8x448xf32>
    %cst_35 = arith.constant dense<0.000000e+00> : vector<8x448xf32>
    %58 = tpu.matmul %2, %52, %cst_35 {dimension_numbers = #tpu.dot_dimension_numbers<[1], [0], [0], [1], [0, 0, 1, 1], [], []>} : vector<8x8xf32>, vector<8x448xf32>, vector<8x448xf32> -> vector<8x448xf32>
    %59 = arith.addf %57, %58 : vector<8x448xf32>
    %60 = vector.broadcast %7 : vector<8x1xf32> to vector<8x448xf32>
    %61 = arith.addf %59, %60 : vector<8x448xf32>
    %cst_36 = arith.constant 0.000000e+00 : f32
    %62 = vector.broadcast %cst_36 : f32 to vector<8x448xf32>
    %63 = arith.maximumf %61, %62 : vector<8x448xf32>
    %cst_37 = arith.constant dense<0.000000e+00> : vector<8x448xf32>
    %64 = tpu.matmul %3, %63, %cst_37 {dimension_numbers = #tpu.dot_dimension_numbers<[1], [0], [0], [1], [0, 0, 1, 1], [], []>} : vector<8x8xf32>, vector<8x448xf32>, vector<8x448xf32> -> vector<8x448xf32>
    %65 = vector.broadcast %8 : vector<8x1xf32> to vector<8x448xf32>
    %66 = arith.addf %64, %65 : vector<8x448xf32>
    %cst_38 = arith.constant 6.000000e-01 : f32
    %67 = vector.broadcast %cst_38 : f32 to vector<8x448xf32>
    %68 = arith.mulf %67, %50 : vector<8x448xf32>
    %69 = arith.addf %68, %66 : vector<8x448xf32>
    %cst_39 = arith.constant dense<0.000000e+00> : vector<8x448xf32>
    %70 = tpu.matmul %4, %69, %cst_39 {dimension_numbers = #tpu.dot_dimension_numbers<[1], [0], [0], [1], [0, 0, 1, 1], [], []>} : vector<8x8xf32>, vector<8x448xf32>, vector<8x448xf32> -> vector<8x448xf32>
    %cst_40 = arith.constant dense<0.000000e+00> : vector<8x448xf32>
    %71 = tpu.matmul %5, %56, %cst_40 {dimension_numbers = #tpu.dot_dimension_numbers<[1], [0], [0], [1], [0, 0, 1, 1], [], []>} : vector<8x8xf32>, vector<8x448xf32>, vector<8x448xf32> -> vector<8x448xf32>
    %72 = arith.addf %70, %71 : vector<8x448xf32>
    %73 = vector.broadcast %9 : vector<8x1xf32> to vector<8x448xf32>
    %74 = arith.addf %72, %73 : vector<8x448xf32>
    %cst_41 = arith.constant 0.000000e+00 : f32
    %75 = vector.broadcast %cst_41 : f32 to vector<8x448xf32>
    %76 = arith.maximumf %74, %75 : vector<8x448xf32>
    %cst_42 = arith.constant dense<0.000000e+00> : vector<8x448xf32>
    %77 = tpu.matmul %6, %76, %cst_42 {dimension_numbers = #tpu.dot_dimension_numbers<[1], [0], [0], [1], [0, 0, 1, 1], [], []>} : vector<8x8xf32>, vector<8x448xf32>, vector<8x448xf32> -> vector<8x448xf32>
    %78 = vector.broadcast %10 : vector<8x1xf32> to vector<8x448xf32>
    %79 = arith.addf %77, %78 : vector<8x448xf32>
    %cst_43 = arith.constant 7.500000e-01 : f32
    %80 = vector.broadcast %cst_43 : f32 to vector<8x448xf32>
    %81 = arith.mulf %80, %50 : vector<8x448xf32>
    %82 = arith.addf %81, %79 : vector<8x448xf32>
    %c1_44 = arith.constant 1 : index
    %c0_45 = arith.constant 0 : index
    %c0_46 = arith.constant 0 : index
    %83 = vector.load %arg6[%c1_44, %c0_45, %c0_46] : memref<2x8x448xf32, #tpu.memory_space<vmem>>, vector<1x8x448xf32>
    %84 = vector.shape_cast %83 : vector<1x8x448xf32> to vector<8x448xf32>
    %85 = vector.shape_cast %82 : vector<8x448xf32> to vector<1x8x448xf32>
    tpu.vector_store %arg6[%c1_44, %c0_45, %c0_46], %85 {strides = array<i32>} : memref<2x8x448xf32, #tpu.memory_space<vmem>>, vector<1x8x448xf32>,
    return
  }
  func.func @transform_0(%arg0: i32) -> (i32, i32, i32) {
    %c0_i32 = arith.constant 0 : i32
    %c0_i32_0 = arith.constant 0 : i32
    %c0_i32_1 = arith.constant 0 : i32
    return %arg0, %c0_i32, %c0_i32_0 : i32, i32, i32
  }
  func.func @transform_1(%arg0: i32) -> (i32, i32, i32) {
    %c0_i32 = arith.constant 0 : i32
    %c0_i32_0 = arith.constant 0 : i32
    %c0_i32_1 = arith.constant 0 : i32
    return %arg0, %c0_i32, %c0_i32_0 : i32, i32, i32
  }
  func.func @transform_2(%arg0: i32) -> (i32, i32, i32) {
    %c0_i32 = arith.constant 0 : i32
    %c0_i32_0 = arith.constant 0 : i32
    %c0_i32_1 = arith.constant 0 : i32
    return %arg0, %c0_i32, %c0_i32_0 : i32, i32, i32
  }
  func.func @transform_3(%arg0: i32) -> (i32, i32) {
    %c0_i32 = arith.constant 0 : i32
    %c0_i32_0 = arith.constant 0 : i32
    %c0_i32_1 = arith.constant 0 : i32
    return %c0_i32, %c0_i32_0 : i32, i32
  }
  func.func @transform_4(%arg0: i32) -> (i32, i32) {
    %c0_i32 = arith.constant 0 : i32
    %c0_i32_0 = arith.constant 0 : i32
    %c0_i32_1 = arith.constant 0 : i32
    return %c0_i32, %c0_i32_0 : i32, i32
  }
  func.func @transform_5(%arg0: i32) -> (i32, i32, i32) {
    %c0_i32 = arith.constant 0 : i32
    %c0_i32_0 = arith.constant 0 : i32
    %c0_i32_1 = arith.constant 0 : i32
    return %arg0, %c0_i32, %c0_i32_0 : i32, i32, i32
  }
}

</mosaic_0001>

<bundles_post_ra>
// kernel: mia_pallas.1
= control target key start
LH: loop header
LB: loop body
LE: loop exit
PB: predicated region body
PF: predicated region fallthrough
CT: control target
= control target key end

     0   :  { %v2349_v1 = vmov 0   ;;  %s2350_s20 = smov 120   ;;  %v2351_v6 = vmov 48   ;;  %s2352_s28 = smov 112   ;;  %vm200_vm0 = vcmask 916480   ;;  %v2353_v39 = vmov 0.0   ;;  %s2850_s4 = inlined_call_operand.vmem [shape: f32[8,52], index: 4, kind: input, shape index: {}]   ;;  %s2851_s3 = inlined_call_operand.vmem [shape: bf16[112,448], index: 3, kind: input, shape index: {}]   ;;  %s2852_s2 = inlined_call_operand.vmem [shape: f32[2,8,112], index: 2, kind: input, shape index: {}]   ;;  %s2853_s1 = inlined_call_operand.vmem [shape: f32[2,8,448], index: 1, kind: input, shape index: {}]   ;;  %s2854_s0 = inlined_call_operand.vmem [shape: f32[2,8,448], index: 0, kind: input, shape index: {}]   ;;  %s2855_s5 = inlined_call_operand.vmem [shape: f32[2,8,448], index: 5, kind: output, shape index: {}]  }
   0x1   :  { %v2393_v0 = vld [vmem:[%s2850_s4] sm:$0xff]  ;;  %236 = vmatprep.mubr.bf16.mxu0 %v2349_v1  ;;  %277 = vmatprep.mubr.bf16.mxu1 %v2349_v1  ;;  %v2406_v3 = vld [vmem:[%s2851_s3 + $0xc] ss:$16 sps:$4 sm:$0xff]   ;;  %v2416_v5 = vld [vmem:[%s2851_s3 + $0x8] ss:$16 sps:$4 sm:$0xff]   ;;  %vm289_vm1 = vcmask 64512  }
   0x2   :  { %287 = vrot.lane.b32.xlu0 %v2393_v0, %s2350_s20  ;;  %v2401_v2 = vld [vmem:[%s2851_s3 + $0x4] ss:$16 sps:$4 sm:$0xff]   ;;  %v2411_v4 = vld [vmem:[%s2851_s3] ss:$16 sps:$4 sm:$0xff]   ;;  %594 = vrot.lane.b32.xlu1 %v2393_v0, %s2352_s28  ;;  %v2354_v43 = vmov 49   ;;  %s2355_s17 = smov 104  }
   0x3   :  { %2302 = vset.pattern.permute.xlu0 %v2351_v6  ;;  %204 = vmatprep.subr.bf16.mxu0 %v2401_v2  ;;  %v2423_v7 = vld [vmem:[%s2851_s3 + $0x24] ss:$16 sps:$4 sm:$0xff]   ;;  %v2430_v8 = vld [vmem:[%s2851_s3 + $0x2c] ss:$16 sps:$4 sm:$0xff]   ;;  %v2437_v9 = vld [vmem:[%s2851_s3 + $0x20] ss:$16 sps:$4 sm:$0xff]  }
   0x4   :  { %245 = vmatprep.subr.bf16.mxu1 %v2406_v3  ;;  %205 = vmatpush1.bf16.msra.mxu0 %v2411_v4  ;;  %v2442_v10 = vld [vmem:[%s2851_s3 + $0x28] ss:$16 sps:$4 sm:$0xff]   ;;  %v2448_v11 = vld [vmem:[%s2851_s3 + $0x44] ss:$16 sps:$4 sm:$0xff]   ;;  %v2454_v12 = vld [vmem:[%s2851_s3 + $0x4c] ss:$16 sps:$4 sm:$0xff]  }
   0x5   :  { %246 = vmatpush1.bf16.msra.mxu1 %v2416_v5  ;;  %206 = vmatprep.subr.bf16.mxu0 %v2423_v7  ;;  %v2459_v13 = vld [vmem:[%s2851_s3 + $0x40] ss:$16 sps:$4 sm:$0xff]   ;;  %v2465_v14 = vld [vmem:[%s2851_s3 + $0x48] ss:$16 sps:$4 sm:$0xff]   ;;  %v2472_v15 = vld [vmem:[%s2851_s3 + $0x64] ss:$16 sps:$4 sm:$0xff]  }
   0x6   :  { %247 = vmatprep.subr.bf16.mxu1 %v2430_v8  ;;  %579 = vperm.xlu0 %2302, %v2393_v0   ;;  %v2478_v16 = vld [vmem:[%s2851_s3 + $0x6c] ss:$16 sps:$4 sm:$0xff]   ;;  %v2484_v17 = vld [vmem:[%s2851_s3 + $0x60] ss:$16 sps:$4 sm:$0xff]   ;;  %v2491_v18 = vld [vmem:[%s2851_s3 + $0x68] ss:$16 sps:$4 sm:$0xff]  }
   0x7   :  { %v2496_v19 = vld [vmem:[%s2851_s3 + $0x84] ss:$16 sps:$4 sm:$0xff]   ;;  %v2502_v20 = vld [vmem:[%s2851_s3 + $0x8c] ss:$16 sps:$4 sm:$0xff]   ;;  %v2507_v21 = vld [vmem:[%s2851_s3 + $0x80] ss:$16 sps:$4 sm:$0xff]   ;;  %2303 = vset.pattern.permute.xlu1 %v2354_v43 }
   0x8   :  { %207 = vmatpush1.bf16.msra.mxu0 %v2437_v9  ;;  %v2513_v22 = vld [vmem:[%s2851_s3 + $0x88] ss:$16 sps:$4 sm:$0xff]   ;;  %v2520_v23 = vld [vmem:[%s2851_s3 + $0xa4] ss:$16 sps:$4 sm:$0xff]   ;;  %v2526_v24 = vld [vmem:[%s2851_s3 + $0xac] ss:$16 sps:$4 sm:$0xff]   ;;  %591 = vperm.xlu1 %2303, %v2393_v0  }
   0x9   :  { %248 = vmatpush1.bf16.msra.mxu1 %v2442_v10  ;;  %208 = vmatprep.subr.bf16.mxu0 %v2448_v11  ;;  %v2532_v25 = vld [vmem:[%s2851_s3 + $0xa0] ss:$16 sps:$4 sm:$0xff]   ;;  %v2539_v26 = vld [vmem:[%s2851_s3 + $0xa8] ss:$16 sps:$4 sm:$0xff]   ;;  %v2544_v27 = vld [vmem:[%s2851_s3 + $0xc4] ss:$16 sps:$4 sm:$0xff]  }
   0xa   :  { %249 = vmatprep.subr.bf16.mxu1 %v2454_v12  ;;  %v2550_v28 = vld [vmem:[%s2851_s3 + $0xcc] ss:$16 sps:$4 sm:$0xff]   ;;  %v2556_v29 = vld [vmem:[%s2851_s3 + $0xc0] ss:$16 sps:$4 sm:$0xff]   ;;  %v2566_v31 = vld [vmem:[%s2851_s3 + $0xc8] ss:$16 sps:$4 sm:$0xff]   ;;  %894 = vrot.lane.b32.xlu0 %v2393_v0, %s2355_s17 }
   0xb   :  { %v58_v30 = vld [vmem:[%s2852_s2] sm:$0xff]  ;;  %v55_v32 = vld [vmem:[%s2853_s1 + $0x8] sm:$0xff]  ;;  %v57_v34 = vld [vmem:[%s2853_s1 + $0x18] sm:$0xff]  ;;  %s2356_s18 = smov 96   ;;  %s2358_s19 = smov 88   ;;  %vm1213_vm2 = vcmask 523264  }
   0xc   :  { %209 = vmatpush1.bf16.msra.mxu0 %v2459_v13  ;;  %v59_v33 = vpack.c.bf16 %v58_v30, %v58_v30  ;;  %v54_v35 = vld [vmem:[%s2853_s1] sm:$0xff]  ;;  %v56_v36 = vld [vmem:[%s2853_s1 + $0x10] sm:$0xff]  ;;  %v2587_v37 = vld [vmem:[%s2854_s0 + $0x8] sm:$0xff]  ;;  %748 = vrot.lane.b32.xlu1 %v2393_v0, %s2356_s18 }
   0xd   :  { %250 = vmatpush1.bf16.msra.mxu1 %v2465_v14  ;;  %210 = vmatprep.subr.bf16.mxu0 %v2472_v15  ;;  %v2593_v38 = vld [vmem:[%s2854_s0 + $0x18] sm:$0xff]  ;;  %v2602_v40 = vld [vmem:[%s2854_s0] sm:$0xff]  ;;  %v2609_v42 = vld [vmem:[%s2854_s0 + $0x10] sm:$0xff] }
   0xe   :  { %251 = vmatprep.subr.bf16.mxu1 %v2478_v16  ;;  %1056 = vrot.lane.b32.xlu0 %v2393_v0, %s2358_s19 }
  0x10   :  { %211 = vmatpush1.bf16.msra.mxu0 %v2484_v17 }
  0x11   :  { %252 = vmatpush1.bf16.msra.mxu1 %v2491_v18  ;;  %212 = vmatprep.subr.bf16.mxu0 %v2496_v19 }
  0x12   :  { %253 = vmatprep.subr.bf16.mxu1 %v2502_v20 }
  0x14   :  { %213 = vmatpush1.bf16.msra.mxu0 %v2507_v21 }
  0x15   :  { %254 = vmatpush1.bf16.msra.mxu1 %v2513_v22  ;;  %214 = vmatprep.subr.bf16.mxu0 %v2520_v23 }
  0x16   :  { %255 = vmatprep.subr.bf16.mxu1 %v2526_v24 }
  0x18   :  { %215 = vmatpush1.bf16.msra.mxu0 %v2532_v25 }
  0x19   :  { %256 = vmatpush1.bf16.msra.mxu1 %v2539_v26  ;;  %216 = vmatprep.subr.bf16.mxu0 %v2544_v27 }
  0x1a   :  { %257 = vmatprep.subr.bf16.mxu1 %v2550_v28 }
  0x1c   :  { %217 = vmatpush1.bf16.msra.mxu0 %v2556_v29 }
  0x1d   :  { %258 = vmatpush1.bf16.msra.mxu1 %v2566_v31  ;;  %292 = vmatprep.subr.mxu0 %v55_v32 }
  0x1e   :  { %363 = vmatprep.subr.mxu1 %v57_v34  ;;  %v2357_v34 = vmov 50  }
  0x1f   :  { %2234 = vmatmul.mubr.msk.bf16.vlgmr.msra.gmra.mrb[0].mxu0 %vm200_vm0, %v59_v33  ;;  %2304 = vset.pattern.permute.xlu1 %v2357_v34 }
  0x20   :  { %2235 = vmatmul.mubr.msk.bf16.vlgmr.msra.gmra.mrb[0].mxu1 %vm200_vm0, %v59_v33  ;;  %293 = vmatpush1.msra.mxu0 %v54_v35  ;;  %v741_v35 = vmul.f32 0.6, %v2587_v37 }
  0x21   :  { %356 = vmatprep.mubr.f32.mxu0 %v2353_v39  ;;  %364 = vmatpush1.msra.mxu1 %v56_v36  ;;  %v743_v36 = vmul.f32 0.6, %v2593_v38 }
  0x22   :  { %427 = vmatprep.mubr.f32.mxu1 %v2353_v39  ;;  %436 = vmatprep.subr.mxu0 %v2587_v37 }
  0x23   :  { %507 = vmatprep.subr.mxu1 %v2593_v38  ;;  %1041 = vperm.xlu1 %2304, %v2393_v0  }
  0x74   :  { %v2604_v41 = vpop.permute.xlu0 %287  ;;  %v2634_v30 = vpop.permute.xlu1 %594 }
  0x75   :  { %2236 = vmatmul.mubr.msk.f32.vlgmr.msra.gmra.mrb[4].mxu0 %vm289_vm1, %v2604_v41  ;;  %2237 = vmatmul.mubr.msk.f32.vlgmr.msra.gmra.mrb[4].mxu1 %vm289_vm1, %v2604_v41 }
  0x76   :  { %437 = vmatpush1.msra.mxu0 %v2602_v40  ;;  %500 = vmatprep.mubr.f32.mxu0 %v2353_v39 }
  0x77   :  { %508 = vmatpush1.msra.mxu1 %v2609_v42  ;;  %571 = vmatprep.mubr.f32.mxu1 %v2353_v39 }
  0x7d   :  { %2238 = vmatmul.mubr.msk.f32.vlgmr.msra.gmra.mrb[4].mxu0 %vm289_vm1, %v2393_v0  ;;  %2239 = vmatmul.mubr.msk.f32.vlgmr.msra.gmra.mrb[4].mxu1 %vm289_vm1, %v2393_v0 }
  0x7e   :  { %662 = vmatprep.mubr.f32.mxu0 %v2353_v39  ;;  %733 = vmatprep.mubr.f32.mxu1 %v2353_v39 }
  0x85   :  { %v2628_v52 = vpop.permute.xlu0 %579 }
  0x87   :  { %v2640_v32 = vpop.permute.xlu1 %591 }
  0x8b   :  { %v2644_v33 = vpop.permute.xlu1 %748 }
  0xf2   :  { %v238_v44 = vpop.f32.mrb[0].mxu0 }
  0xf3   :  { %v279_v45 = vpop.f32.mrb[0].mxu1  ;;  %v240_v46 = vpop.f32.mrb[1].mxu0 }
  0xf4   :  { %v281_v47 = vpop.f32.mrb[1].mxu1  ;;  %v242_v48 = vpop.f32.mrb[2].mxu0 }
  0xf5   :  { %v283_v49 = vpop.f32.mrb[2].mxu1  ;;  %v243_v50 = vpop.f32.mrb[3].mxu0  ;;  %v742_v48 = vmul.f32 0.6, %v2609_v42 }
  0xf6   :  { %v284_v51 = vpop.f32.mrb[3].mxu1 }
 0x150   :  { %v502_v53 = vpop.f32.mrb[4].mxu0  ;;  %v573_v54 = vpop.f32.mrb[4].mxu1 }
 0x151   :  { %v582_v55 = vadd.f32 %v2628_v52, %v502_v53  ;;  %v584_v56 = vadd.f32 %v2628_v52, %v573_v54  ;;  %v504_v57 = vpop.f32.mrb[5].mxu0  ;;  %v575_v58 = vpop.f32.mrb[5].mxu1 }
 0x152   :  { %v583_v59 = vadd.f32 %v2628_v52, %v504_v57  ;;  %v585_v60 = vadd.f32 %v2628_v52, %v575_v58  ;;  %v2662_v58 = vpop.permute.xlu0 %894 }
 0x153   :  { %v586_v63 = vmax.f32 %v582_v55, 0.0  ;;  %v588_v6 = vmax.f32 %v584_v56, 0.0 }
 0x154   :  { %v587_v61 = vmax.f32 %v583_v59, 0.0  ;;  %v589_v62 = vmax.f32 %v585_v60, 0.0  ;;  %v2359_v59 = vmov 51   ;;  %v2671_v60 = vpop.permute.xlu1 %1041 }
 0x155   :  { %2305 = vset.pattern.permute.xlu1 %v2359_v59  ;;  %2306 = vset.pattern.permute.xlu0 %v2359_v59 }
 0x156   :  { %598 = vmatprep.subr.mxu0 %v587_v61  ;;  %669 = vmatprep.subr.mxu1 %v589_v62 }
 0x157   :  { %599 = vmatpush1.msra.mxu0 %v586_v63  ;;  %670 = vmatpush1.msra.mxu1 %v588_v6 }
 0x158   :  { %2240 = vmatmul.mubr.msk.f32.vlgmr.msra.gmra.mrb[6].mxu0 %vm289_vm1, %v2634_v30  ;;  %2241 = vmatmul.mubr.msk.f32.vlgmr.msra.gmra.mrb[6].mxu1 %vm289_vm1, %v2634_v30 }
 0x159   :  { %752 = vmatprep.subr.mxu0 %v240_v46  ;;  %823 = vmatprep.subr.mxu1 %v281_v47  ;;  %v740_v46 = vmul.f32 0.6, %v2602_v40 }
 0x15a   :  { %753 = vmatpush1.msra.mxu0 %v238_v44  ;;  %824 = vmatpush1.msra.mxu1 %v279_v45 }
 0x15b   :  { %816 = vmatprep.mubr.f32.mxu0 %v2353_v39  ;;  %887 = vmatprep.mubr.f32.mxu1 %v2353_v39 }
 0x15c   :  { %2242 = vmatmul.mubr.msk.f32.vlgmr.msra.gmra.mrb[8].mxu0 %vm289_vm1, %v2644_v33  ;;  %2243 = vmatmul.mubr.msk.f32.vlgmr.msra.gmra.mrb[8].mxu1 %vm289_vm1, %v2644_v33 }
 0x15d   :  { %962 = vmatprep.mubr.f32.mxu0 %v2353_v39  ;;  %1033 = vmatprep.mubr.f32.mxu1 %v2353_v39 }
 0x15e   :  { %1053 = vperm.xlu1 %2305, %v2393_v0  }
 0x22b   :  { %v664_v43 = vpop.f32.mrb[6].mxu0  ;;  %v735_v44 = vpop.f32.mrb[6].mxu1 }
 0x22c   :  { %v665_v45 = vadd.f32 %v664_v43, %v2640_v32  ;;  %v736_v47 = vadd.f32 %v735_v44, %v2640_v32  ;;  %v666_v49 = vpop.f32.mrb[7].mxu0  ;;  %v737_v50 = vpop.f32.mrb[7].mxu1 }
 0x22d   :  { %v667_v51 = vadd.f32 %v666_v49, %v2640_v32  ;;  %v738_v53 = vadd.f32 %v737_v50, %v2640_v32 }
 0x22e   :  { %v744_v56 = vadd.f32 %v740_v46, %v665_v45  ;;  %v746_v57 = vadd.f32 %v742_v48, %v736_v47  ;;  %v2677_v48 = vpop.permute.xlu0 %1056 }
 0x22f   :  { %v745_v54 = vadd.f32 %v741_v35, %v667_v51  ;;  %v747_v55 = vadd.f32 %v743_v36, %v738_v53 }
 0x231   :  { %898 = vmatprep.subr.mxu0 %v745_v54  ;;  %969 = vmatprep.subr.mxu1 %v747_v55 }
 0x232   :  { %899 = vmatpush1.msra.mxu0 %v744_v56  ;;  %970 = vmatpush1.msra.mxu1 %v746_v57 }
 0x233   :  { %2244 = vmatmul.mubr.msk.f32.vlgmr.msra.gmra.mrb[8].mxu0 %vm289_vm1, %v2662_v58  ;;  %2245 = vmatmul.mubr.msk.f32.vlgmr.msra.gmra.mrb[8].mxu1 %vm289_vm1, %v2662_v58 }
 0x234   :  { %1124 = vmatprep.mubr.f32.mxu0 %v2353_v39  ;;  %1195 = vmatprep.mubr.f32.mxu1 %v2353_v39 }
 0x306   :  { %v964_v61 = vpop.f32.mrb[8].mxu0  ;;  %v1035_v62 = vpop.f32.mrb[8].mxu1 }
 0x307   :  { %v1044_v63 = vadd.f32 %v2671_v60, %v964_v61  ;;  %v1046_v6 = vadd.f32 %v2671_v60, %v1035_v62  ;;  %v966_v34 = vpop.f32.mrb[9].mxu0  ;;  %v1037_v35 = vpop.f32.mrb[9].mxu1 }
 0x308   :  { %v1045_v36 = vadd.f32 %v2671_v60, %v966_v34  ;;  %v1047_v43 = vadd.f32 %v2671_v60, %v1037_v35 }
 0x309   :  { %v1048_v46 = vmax.f32 %v1044_v63, 0.0  ;;  %v1050_v47 = vmax.f32 %v1046_v6, 0.0 }
 0x30a   :  { %v1049_v44 = vmax.f32 %v1045_v36, 0.0  ;;  %v1051_v45 = vmax.f32 %v1047_v43, 0.0 }
 0x30c   :  { %1060 = vmatprep.subr.mxu0 %v1049_v44  ;;  %1131 = vmatprep.subr.mxu1 %v1051_v45 }
 0x30d   :  { %1061 = vmatpush1.msra.mxu0 %v1048_v46  ;;  %1132 = vmatpush1.msra.mxu1 %v1050_v47 }
 0x30e   :  { %2246 = vmatmul.mubr.msk.f32.vlgmr.msra.gmra.mrb[10].mxu0 %vm289_vm1, %v2677_v48  ;;  %2247 = vmatmul.mubr.msk.f32.vlgmr.msra.gmra.mrb[10].mxu1 %vm289_vm1, %v2677_v48 }
 0x30f   :  { %1231 = vmatprep.subr.bf16.mxu0 %v2401_v2  ;;  %1272 = vmatprep.subr.bf16.mxu1 %v2406_v3  ;;  %v2253_v2 = vld [vmem:[%s2853_s1 + $0x28] sm:$0xff]  ;;  %v2255_v3 = vld [vmem:[%s2853_s1 + $0x38] sm:$0xff] }
 0x310   :  { %1232 = vmatpush1.bf16.msra.mxu0 %v2411_v4  ;;  %1273 = vmatpush1.bf16.msra.mxu1 %v2416_v5  ;;  %v2252_v5 = vld [vmem:[%s2853_s1 + $0x20] sm:$0xff] }
 0x311   :  { %1233 = vmatprep.subr.bf16.mxu0 %v2423_v7  ;;  %1274 = vmatprep.subr.bf16.mxu1 %v2430_v8  ;;  %v2254_v7 = vld [vmem:[%s2853_s1 + $0x30] sm:$0xff]  ;;  %v2733_v8 = vld [vmem:[%s2854_s0 + $0x28] sm:$0xff] }
 0x312   :  { %1263 = vmatprep.mubr.bf16.mxu0 %v2349_v1  ;;  %1304 = vmatprep.mubr.bf16.mxu1 %v2349_v1  ;;  %v2256_v1 = vld [vmem:[%s2852_s2 + $0x8] sm:$0xff] }
 0x313   :  { %v1227_v4 = vpack.c.bf16 %v2256_v1, %v2256_v1 }
 0x314   :  { %1234 = vmatpush1.bf16.msra.mxu0 %v2437_v9  ;;  %1275 = vmatpush1.bf16.msra.mxu1 %v2442_v10  ;;  %v2738_v9 = vld [vmem:[%s2854_s0 + $0x38] sm:$0xff]  ;;  %v2747_v10 = vld [vmem:[%s2854_s0 + $0x20] sm:$0xff] }
 0x315   :  { %1235 = vmatprep.subr.bf16.mxu0 %v2448_v11  ;;  %1276 = vmatprep.subr.bf16.mxu1 %v2454_v12  ;;  %v2752_v11 = vld [vmem:[%s2854_s0 + $0x30] sm:$0xff]  ;;  %v2768_v12 = vpop.permute.xlu1 %1053  ;;  %v1747_v36 = vmul.f32 0.6, %v2747_v10 }
 0x316   :  { %v1749_v44 = vmul.f32 0.6, %v2752_v11 }
 0x318   :  { %1236 = vmatpush1.bf16.msra.mxu0 %v2459_v13  ;;  %1277 = vmatpush1.bf16.msra.mxu1 %v2465_v14  ;;  %v1202_v13 = vmul.f32 0.75, %v2602_v40  ;;  %v1204_v14 = vmul.f32 0.75, %v2609_v42 }
 0x319   :  { %1237 = vmatprep.subr.bf16.mxu0 %v2472_v15  ;;  %1278 = vmatprep.subr.bf16.mxu1 %v2478_v16  ;;  %v1203_v15 = vmul.f32 0.75, %v2587_v37  ;;  %v1205_v16 = vmul.f32 0.75, %v2593_v38 }
 0x31c   :  { %1238 = vmatpush1.bf16.msra.mxu0 %v2484_v17  ;;  %1279 = vmatpush1.bf16.msra.mxu1 %v2491_v18 }
 0x31d   :  { %1239 = vmatprep.subr.bf16.mxu0 %v2496_v19  ;;  %1280 = vmatprep.subr.bf16.mxu1 %v2502_v20 }
 0x320   :  { %1240 = vmatpush1.bf16.msra.mxu0 %v2507_v21  ;;  %1281 = vmatpush1.bf16.msra.mxu1 %v2513_v22 }
 0x321   :  { %1241 = vmatprep.subr.bf16.mxu0 %v2520_v23  ;;  %1282 = vmatprep.subr.bf16.mxu1 %v2526_v24 }
 0x324   :  { %1242 = vmatpush1.bf16.msra.mxu0 %v2532_v25  ;;  %1283 = vmatpush1.bf16.msra.mxu1 %v2539_v26 }
 0x325   :  { %1243 = vmatprep.subr.bf16.mxu0 %v2544_v27  ;;  %1284 = vmatprep.subr.bf16.mxu1 %v2550_v28 }
 0x328   :  { %1244 = vmatpush1.bf16.msra.mxu0 %v2556_v29  ;;  %1285 = vmatpush1.bf16.msra.mxu1 %v2566_v31 }
 0x329   :  { %1313 = vmatprep.subr.mxu0 %v2253_v2  ;;  %1384 = vmatprep.subr.mxu1 %v2255_v3 }
 0x32b   :  { %2257 = vmatmul.mubr.msk.bf16.vlgmr.msra.gmra.mrb[12].mxu0 %vm200_vm0, %v1227_v4  ;;  %2258 = vmatmul.mubr.msk.bf16.vlgmr.msra.gmra.mrb[12].mxu1 %vm200_vm0, %v1227_v4 }
 0x32c   :  { %1314 = vmatpush1.msra.mxu0 %v2252_v5  ;;  %1377 = vmatprep.mubr.f32.mxu0 %v2353_v39 }
 0x32d   :  { %1385 = vmatpush1.msra.mxu1 %v2254_v7  ;;  %1448 = vmatprep.mubr.f32.mxu1 %v2353_v39 }
 0x32e   :  { %1455 = vmatprep.subr.mxu0 %v2733_v8  ;;  %1526 = vmatprep.subr.mxu1 %v2738_v9 }
 0x333   :  { %2259 = vmatmul.mubr.msk.f32.vlgmr.msra.gmra.mrb[16].mxu0 %vm289_vm1, %v2604_v41  ;;  %2260 = vmatmul.mubr.msk.f32.vlgmr.msra.gmra.mrb[16].mxu1 %vm289_vm1, %v2604_v41 }
 0x334   :  { %1456 = vmatpush1.msra.mxu0 %v2747_v10  ;;  %1519 = vmatprep.mubr.f32.mxu0 %v2353_v39 }
 0x335   :  { %1527 = vmatpush1.msra.mxu1 %v2752_v11  ;;  %1590 = vmatprep.mubr.f32.mxu1 %v2353_v39 }
 0x33b   :  { %2261 = vmatmul.mubr.msk.f32.vlgmr.msra.gmra.mrb[16].mxu0 %vm289_vm1, %v2393_v0  ;;  %2262 = vmatmul.mubr.msk.f32.vlgmr.msra.gmra.mrb[16].mxu1 %vm289_vm1, %v2393_v0 }
 0x33c   :  { %1669 = vmatprep.mubr.f32.mxu0 %v2353_v39  ;;  %1740 = vmatprep.mubr.f32.mxu1 %v2353_v39 }
 0x3e1   :  { %v1126_v17 = vpop.f32.mrb[10].mxu0  ;;  %v1197_v18 = vpop.f32.mrb[10].mxu1 }
 0x3e2   :  { %v1127_v19 = vadd.f32 %v1126_v17, %v2768_v12  ;;  %v1198_v0 = vadd.f32 %v1197_v18, %v2768_v12  ;;  %v1128_v20 = vpop.f32.mrb[11].mxu0  ;;  %v1199_v21 = vpop.f32.mrb[11].mxu1 }
 0x3e3   :  { %v1129_v22 = vadd.f32 %v1128_v20, %v2768_v12  ;;  %v1200_v23 = vadd.f32 %v1199_v21, %v2768_v12  ;;  %v2191_v20 = vmul.f32 0.75, %v2752_v11  ;;  %v2192_v21 = vmul.f32 0.75, %v2738_v9 }
 0x3e4   :  { %v1206_v24 = vadd.f32 %v1202_v13, %v1127_v19  ;;  %v1208_v25 = vadd.f32 %v1204_v14, %v1198_v0 }
 0x3e5   :  { %v1207_v26 = vadd.f32 %v1203_v15, %v1129_v22  ;;  %v1209_v27 = vadd.f32 %v1205_v16, %v1200_v23 }
 0x3e6   :  { %1210 = vst [vmem:[%s2855_s5] sm:$0xff] %v1206_v24  ;;  %1212 = vst [vmem:[%s2855_s5 + $0x10] sm:$0xff] %v1208_v25 }
 0x3e7   :  { %1211 = vst [vmem:[%s2855_s5 + $0x8] sm:$0xff] %v1207_v26  ;;  %1214 = vst.msk [vmem:[%s2855_s5 + $0x18] sm:$0xff] %vm1213_vm2, %v1209_v27 }
 0x3fe   :  { %v1265_v28 = vpop.f32.mrb[12].mxu0  ;;  %v1306_v29 = vpop.f32.mrb[12].mxu1 }
 0x3ff   :  { %v1267_v31 = vpop.f32.mrb[13].mxu0  ;;  %v1308_v37 = vpop.f32.mrb[13].mxu1 }
 0x400   :  { %v1269_v38 = vpop.f32.mrb[14].mxu0  ;;  %v1310_v40 = vpop.f32.mrb[14].mxu1 }
 0x401   :  { %v1270_v41 = vpop.f32.mrb[15].mxu0  ;;  %v1311_v42 = vpop.f32.mrb[15].mxu1 }
 0x40e   :  { %v1521_v49 = vpop.f32.mrb[16].mxu0  ;;  %v1592_v50 = vpop.f32.mrb[16].mxu1 }
 0x40f   :  { %v1597_v51 = vadd.f32 %v1521_v49, %v2628_v52  ;;  %v1599_v53 = vadd.f32 %v1592_v50, %v2628_v52  ;;  %v1523_v54 = vpop.f32.mrb[17].mxu0  ;;  %v1594_v55 = vpop.f32.mrb[17].mxu1 }
 0x410   :  { %v1598_v56 = vadd.f32 %v1523_v54, %v2628_v52  ;;  %v1600_v57 = vadd.f32 %v1594_v55, %v2628_v52  ;;  %v1748_v52 = vmul.f32 0.6, %v2733_v8 }
 0x411   :  { %v1601_v62 = vmax.f32 %v1597_v51, 0.0  ;;  %v1603_v63 = vmax.f32 %v1599_v53, 0.0 }
 0x412   :  { %v1602_v59 = vmax.f32 %v1598_v56, 0.0  ;;  %v1604_v61 = vmax.f32 %v1600_v57, 0.0 }
 0x414   :  { %1605 = vmatprep.subr.mxu0 %v1602_v59  ;;  %1676 = vmatprep.subr.mxu1 %v1604_v61 }
 0x415   :  { %1606 = vmatpush1.msra.mxu0 %v1601_v62  ;;  %1677 = vmatpush1.msra.mxu1 %v1603_v63 }
 0x416   :  { %2263 = vmatmul.mubr.msk.f32.vlgmr.msra.gmra.mrb[18].mxu0 %vm289_vm1, %v2634_v30  ;;  %2264 = vmatmul.mubr.msk.f32.vlgmr.msra.gmra.mrb[18].mxu1 %vm289_vm1, %v2634_v30  ;;  %v1750_v30 = vmul.f32 0.6, %v2738_v9 }
 0x417   :  { %1755 = vmatprep.subr.mxu0 %v1267_v31  ;;  %1826 = vmatprep.subr.mxu1 %v1308_v37 }
 0x418   :  { %1756 = vmatpush1.msra.mxu0 %v1265_v28  ;;  %1827 = vmatpush1.msra.mxu1 %v1306_v29 }
 0x419   :  { %1819 = vmatprep.mubr.f32.mxu0 %v2353_v39  ;;  %1890 = vmatprep.mubr.f32.mxu1 %v2353_v39 }
 0x41a   :  { %2265 = vmatmul.mubr.msk.f32.vlgmr.msra.gmra.mrb[20].mxu0 %vm289_vm1, %v2644_v33  ;;  %2266 = vmatmul.mubr.msk.f32.vlgmr.msra.gmra.mrb[20].mxu1 %vm289_vm1, %v2644_v33 }
 0x41b   :  { %1961 = vmatprep.mubr.f32.mxu0 %v2353_v39  ;;  %2032 = vmatprep.mubr.f32.mxu1 %v2353_v39 }
 0x4e9   :  { %v1671_v6 = vpop.f32.mrb[18].mxu0  ;;  %v1742_v34 = vpop.f32.mrb[18].mxu1 }
 0x4ea   :  { %v1672_v35 = vadd.f32 %v1671_v6, %v2640_v32  ;;  %v1743_v43 = vadd.f32 %v1742_v34, %v2640_v32  ;;  %v1673_v45 = vpop.f32.mrb[19].mxu0  ;;  %v1744_v33 = vpop.f32.mrb[19].mxu1 }
 0x4eb   :  { %v1674_v46 = vadd.f32 %v1673_v45, %v2640_v32  ;;  %v1745_v47 = vadd.f32 %v1744_v33, %v2640_v32 }
 0x4ec   :  { %v1751_v3 = vadd.f32 %v1747_v36, %v1672_v35  ;;  %v1753_v4 = vadd.f32 %v1749_v44, %v1743_v43 }
 0x4ed   :  { %v1752_v1 = vadd.f32 %v1748_v52, %v1674_v46  ;;  %v1754_v2 = vadd.f32 %v1750_v30, %v1745_v47 }
 0x4ef   :  { %1897 = vmatprep.subr.mxu0 %v1752_v1  ;;  %1968 = vmatprep.subr.mxu1 %v1754_v2 }
 0x4f0   :  { %1898 = vmatpush1.msra.mxu0 %v1751_v3  ;;  %1969 = vmatpush1.msra.mxu1 %v1753_v4 }
 0x4f1   :  { %2267 = vmatmul.mubr.msk.f32.vlgmr.msra.gmra.mrb[20].mxu0 %vm289_vm1, %v2662_v58  ;;  %2268 = vmatmul.mubr.msk.f32.vlgmr.msra.gmra.mrb[20].mxu1 %vm289_vm1, %v2662_v58 }
 0x4f2   :  { %2111 = vmatprep.mubr.f32.mxu0 %v2353_v39  ;;  %2182 = vmatprep.mubr.f32.mxu1 %v2353_v39  ;;  %v2189_v39 = vmul.f32 0.75, %v2747_v10 }
 0x5c4   :  { %v1963_v5 = vpop.f32.mrb[20].mxu0  ;;  %v2034_v32 = vpop.f32.mrb[20].mxu1 }
 0x5c5   :  { %v2039_v7 = vadd.f32 %v1963_v5, %v2671_v60  ;;  %v2041_v13 = vadd.f32 %v2034_v32, %v2671_v60  ;;  %v1965_v14 = vpop.f32.mrb[21].mxu0  ;;  %v2036_v15 = vpop.f32.mrb[21].mxu1 }
 0x5c6   :  { %v2040_v16 = vadd.f32 %v1965_v14, %v2671_v60  ;;  %v2042_v17 = vadd.f32 %v2036_v15, %v2671_v60  ;;  %v2190_v60 = vmul.f32 0.75, %v2733_v8 }
 0x5c7   :  { %v2043_v0 = vmax.f32 %v2039_v7, 0.0  ;;  %v2045_v58 = vmax.f32 %v2041_v13, 0.0 }
 0x5c8   :  { %v2044_v18 = vmax.f32 %v2040_v16, 0.0  ;;  %v2046_v19 = vmax.f32 %v2042_v17, 0.0 }
 0x5ca   :  { %2047 = vmatprep.subr.mxu0 %v2044_v18  ;;  %2118 = vmatprep.subr.mxu1 %v2046_v19 }
 0x5cb   :  { %2048 = vmatpush1.msra.mxu0 %v2043_v0  ;;  %2119 = vmatpush1.msra.mxu1 %v2045_v58 }
 0x5cc   :  { %2269 = vmatmul.mubr.msk.f32.vlgmr.msra.gmra.mrb[22].mxu0 %vm289_vm1, %v2677_v48  ;;  %2270 = vmatmul.mubr.msk.f32.vlgmr.msra.gmra.mrb[22].mxu1 %vm289_vm1, %v2677_v48 }
 0x69f   :  { %v2113_v22 = vpop.f32.mrb[22].mxu0  ;;  %v2184_v23 = vpop.f32.mrb[22].mxu1 }
 0x6a0   :  { %v2114_v24 = vadd.f32 %v2113_v22, %v2768_v12  ;;  %v2185_v25 = vadd.f32 %v2184_v23, %v2768_v12  ;;  %v2115_v26 = vpop.f32.mrb[23].mxu0  ;;  %v2186_v27 = vpop.f32.mrb[23].mxu1 }
 0x6a1   :  { %v2116_v28 = vadd.f32 %v2115_v26, %v2768_v12  ;;  %v2187_v48 = vadd.f32 %v2186_v27, %v2768_v12 }
 0x6a2   :  { %v2193_v29 = vadd.f32 %v2189_v39, %v2114_v24  ;;  %v2195_v10 = vadd.f32 %v2191_v20, %v2185_v25 }
 0x6a3   :  { %v2194_v31 = vadd.f32 %v2190_v60, %v2116_v28  ;;  %v2196_v11 = vadd.f32 %v2192_v21, %v2187_v48 }
 0x6a4   :  { %2271 = vst [vmem:[%s2855_s5 + $0x20] sm:$0xff] %v2193_v29  ;;  %2273 = vst [vmem:[%s2855_s5 + $0x30] sm:$0xff] %v2195_v10 }
 0x6a5   :  { %2272 = vst [vmem:[%s2855_s5 + $0x28] sm:$0xff] %v2194_v31  ;;  %2274 = vst.msk [vmem:[%s2855_s5 + $0x38] sm:$0xff] %vm1213_vm2, %v2196_v11 }

</bundles_post_ra>
